<compile_context>
chip_gen: v7x
topology: tpu7x:2x2x1
jax: 0.10.0
libtpu: 0.0.40
codegen_flags: <defaults>
</compile_context>

<pallas_src>
import numpy as np
import jax
import jax.numpy as jnp
from jax import lax
from jax.experimental import pallas as pl
from jax.experimental.pallas import tpu as pltpu


# --------------------------------------------------------------------------
# Fused SE kernel: global-avg-pool -> FC -> ReLU -> FC -> sigmoid -> scale
# --------------------------------------------------------------------------
def se_attention_kernel(x_ref, w1_ref, w2_ref, o_ref):
    # x_ref:  (1, C, HW)  one batch element, NCHW flattened over H*W (lane dim)
    # w1_ref: (Cr, C)     first Linear weight, PyTorch (out, in) layout, no bias
    # w2_ref: (C, Cr)     second Linear weight, PyTorch (out, in) layout, no bias
    # o_ref:  (1, C, HW)
    x = x_ref[0]                                                  # (C, HW) f32

    # Squeeze: global average pool over the spatial (lane) axis.
    m = jnp.mean(x, axis=1, keepdims=True)                        # (C, 1)

    # Excite: bottleneck MLP. Tiny mat-vecs; keep f32 accumulation.
    h = lax.dot_general(w1_ref[...], m, (((1,), (0,)), ((), ())),
                        preferred_element_type=jnp.float32)       # (Cr, 1)
    h = jnp.maximum(h, 0.0)                                       # ReLU
    s = lax.dot_general(w2_ref[...], h, (((1,), (0,)), ((), ())),
                        preferred_element_type=jnp.float32)       # (C, 1)
    s = 1.0 / (1.0 + jnp.exp(-s))                                 # sigmoid

    # Scale: broadcast the per-channel gate across all spatial lanes.
    o_ref[0] = x * s


# --------------------------------------------------------------------------
# Wrapper
# --------------------------------------------------------------------------
def se_attention(x, w1, w2):
    """x: (B, C, H, W) NCHW; w1: (C//r, C); w2: (C, C//r).  Returns (B, C, H, W)."""
    B, C, H, W = x.shape
    HW = H * W
    Cr = w1.shape[0]
    xf = x.reshape(B, C, HW)                     # contiguous reshape (free)

    out = pl.pallas_call(
        se_attention_kernel,
        out_shape=jax.ShapeDtypeStruct((B, C, HW), x.dtype),
        grid=(B,),
        in_specs=[
            pl.BlockSpec((1, C, HW), lambda b: (b, 0, 0)),
            pl.BlockSpec((Cr, C), lambda b: (0, 0)),   # weights: constant index map,
            pl.BlockSpec((C, Cr), lambda b: (0, 0)),   # DMA'd once, reused across grid
        ],
        out_specs=pl.BlockSpec((1, C, HW), lambda b: (b, 0, 0)),
        compiler_params=pltpu.CompilerParams(
            dimension_semantics=("parallel",)),        # shards batch across TCs on v7x
    )(xf, w1, w2)
    return out.reshape(B, C, H, W)


# --------------------------------------------------------------------------
# Pure-JAX reference (mirrors the PyTorch forward) for correctness check
# --------------------------------------------------------------------------
def reference(x, w1, w2):
    y = jnp.mean(x, axis=(2, 3))                       # (B, C) adaptive avg pool to 1x1
    h = jnp.maximum(y @ w1.T, 0.0)                     # Linear(C, C//r, bias=False)+ReLU
    s = jax.nn.sigmoid(h @ w2.T)                       # Linear(C//r, C, bias=False)+Sigmoid
    return x * s[:, :, None, None]


# --------------------------------------------------------------------------
if __name__ == "__main__":
    # Small but hardware-friendly shapes: C=128 keeps channels lane/sublane
    # aligned, reduction=16 as in the module default.
    B, C, H, W = 2, 128, 16, 16
    reduction = 16
    Cr = C // reduction

    key = jax.random.PRNGKey(0)
    kx, k1, k2 = jax.random.split(key, 3)
    x = jax.random.normal(kx, (B, C, H, W), jnp.float32)          # NCHW
    w1 = 0.1 * jax.random.normal(k1, (Cr, C), jnp.float32)        # fc[0].weight
    w2 = 0.1 * jax.random.normal(k2, (C, Cr), jnp.float32)        # fc[2].weight

    out = se_attention(x, w1, w2)
    out = jax.block_until_ready(out)

    ref = reference(x, w1, w2)
    assert out.shape == (B, C, H, W)
    np.testing.assert_allclose(np.asarray(out), np.asarray(ref),
                               rtol=1e-4, atol=1e-4)
    print("KERNEL_OK")
</pallas_src>

<mosaic_0001>
module attributes {stable_mosaic.version = 11 : i64} {
  func.func @se_attention_kernel(%arg0: i32, %arg1: memref<1x128x256xf32, #tpu.memory_space<vmem>>, %arg2: memref<8x128xf32, #tpu.memory_space<vmem>>, %arg3: memref<128x8xf32, #tpu.memory_space<vmem>>, %arg4: memref<1x128x256xf32, #tpu.memory_space<vmem>>) attributes {dimension_semantics = [#tpu.dimension_semantics<parallel>], iteration_bounds = array<i64: 2>, scalar_prefetch = 0 : i64, scratch_operands = 0 : i64, tpu.core_type = #tpu.core_type<tc>, window_params = [{transform_indices = @transform_0, window_bounds = array<i64: 1, 128, 256>}, {pipeline_mode = #tpu.pipeline_mode<synchronous>, transform_indices = @transform_1, window_bounds = array<i64: 8, 128>}, {pipeline_mode = #tpu.pipeline_mode<synchronous>, transform_indices = @transform_2, window_bounds = array<i64: 128, 8>}, {transform_indices = @transform_3, window_bounds = array<i64: 1, 128, 256>}]} {
    %c0 = arith.constant 0 : index
    %c0_0 = arith.constant 0 : index
    %c0_1 = arith.constant 0 : index
    %0 = vector.load %arg1[%c0, %c0_0, %c0_1] : memref<1x128x256xf32, #tpu.memory_space<vmem>>, vector<1x128x256xf32>
    %1 = vector.shape_cast %0 : vector<1x128x256xf32> to vector<128x256xf32>
    %cst = arith.constant dense<0.000000e+00> : vector<128xf32>
    %2 = vector.multi_reduction <add>, %1, %cst [1] : vector<128x256xf32> to vector<128xf32>
    %3 = vector.shape_cast %2 : vector<128xf32> to vector<128x1xf32>
    %cst_2 = arith.constant 2.560000e+02 : f32
    %4 = vector.broadcast %cst_2 : f32 to vector<128x1xf32>
    %5 = arith.divf %3, %4 : vector<128x1xf32>
    %c0_3 = arith.constant 0 : index
    %c0_4 = arith.constant 0 : index
    %6 = vector.load %arg2[%c0_3, %c0_4] : memref<8x128xf32, #tpu.memory_space<vmem>>, vector<8x128xf32>
    %cst_5 = arith.constant dense<0.000000e+00> : vector<8x1xf32>
    %7 = tpu.matmul %6, %5, %cst_5 {dimension_numbers = #tpu.dot_dimension_numbers<[1], [0], [0], [1], [0, 0, 1, 1], [], []>} : vector<8x128xf32>, vector<128x1xf32>, vector<8x1xf32> -> vector<8x1xf32>
    %cst_6 = arith.constant 0.000000e+00 : f32
    %8 = vector.broadcast %cst_6 : f32 to vector<8x1xf32>
    %9 = arith.maximumf %7, %8 : vector<8x1xf32>
    %c0_7 = arith.constant 0 : index
    %c0_8 = arith.constant 0 : index
    %10 = vector.load %arg3[%c0_7, %c0_8] : memref<128x8xf32, #tpu.memory_space<vmem>>, vector<128x8xf32>
    %cst_9 = arith.constant dense<0.000000e+00> : vector<128x1xf32>
    %11 = tpu.matmul %10, %9, %cst_9 {dimension_numbers = #tpu.dot_dimension_numbers<[1], [0], [0], [1], [0, 0, 1, 1], [], []>} : vector<128x8xf32>, vector<8x1xf32>, vector<128x1xf32> -> vector<128x1xf32>
    %cst_10 = arith.constant 0.000000e+00 : f32
    %12 = vector.broadcast %cst_10 : f32 to vector<128x1xf32>
    %13 = arith.subf %12, %11 : vector<128x1xf32>
    %14 = math.exp %13 : vector<128x1xf32>
    %cst_11 = arith.constant 1.000000e+00 : f32
    %15 = vector.broadcast %cst_11 : f32 to vector<128x1xf32>
    %16 = arith.addf %15, %14 : vector<128x1xf32>
    %cst_12 = arith.constant 1.000000e+00 : f32
    %17 = vector.broadcast %cst_12 : f32 to vector<128x1xf32>
    %18 = arith.divf %17, %16 : vector<128x1xf32>
    %19 = vector.broadcast %18 : vector<128x1xf32> to vector<128x256xf32>
    %20 = arith.mulf %1, %19 : vector<128x256xf32>
    %c0_13 = arith.constant 0 : index
    %c0_14 = arith.constant 0 : index
    %c0_15 = arith.constant 0 : index
    %21 = vector.load %arg4[%c0_13, %c0_14, %c0_15] : memref<1x128x256xf32, #tpu.memory_space<vmem>>, vector<1x128x256xf32>
    %22 = vector.shape_cast %21 : vector<1x128x256xf32> to vector<128x256xf32>
    %23 = vector.shape_cast %20 : vector<128x256xf32> to vector<1x128x256xf32>
    tpu.vector_store %arg4[%c0_13, %c0_14, %c0_15], %23 {strides = array<i32>} : memref<1x128x256xf32, #tpu.memory_space<vmem>>, vector<1x128x256xf32>,
    return
  }
  func.func @transform_0(%arg0: i32) -> (i32, i32, i32) {
    %c0_i32 = arith.constant 0 : i32
    %c0_i32_0 = arith.constant 0 : i32
    %c0_i32_1 = arith.constant 0 : i32
    return %arg0, %c0_i32, %c0_i32_0 : i32, i32, i32
  }
  func.func @transform_1(%arg0: i32) -> (i32, i32) {
    %c0_i32 = arith.constant 0 : i32
    %c0_i32_0 = arith.constant 0 : i32
    %c0_i32_1 = arith.constant 0 : i32
    return %c0_i32, %c0_i32_0 : i32, i32
  }
  func.func @transform_2(%arg0: i32) -> (i32, i32) {
    %c0_i32 = arith.constant 0 : i32
    %c0_i32_0 = arith.constant 0 : i32
    %c0_i32_1 = arith.constant 0 : i32
    return %c0_i32, %c0_i32_0 : i32, i32
  }
  func.func @transform_3(%arg0: i32) -> (i32, i32, i32) {
    %c0_i32 = arith.constant 0 : i32
    %c0_i32_0 = arith.constant 0 : i32
    %c0_i32_1 = arith.constant 0 : i32
    return %arg0, %c0_i32, %c0_i32_0 : i32, i32, i32
  }
}

</mosaic_0001>

<bundles_post_ra>
// kernel: tpu_custom_call.1
= control target key start
LH: loop header
LB: loop body
LE: loop exit
PB: predicated region body
PF: predicated region fallthrough
CT: control target
= control target key end

     0   :  { %8 = vsyncpa [#allocation3], 0  ;;  %s1732_s0 = inlined_call_operand.hbm [shape: f32[2,128,256], index: 0, kind: input, shape index: {}]   ;;  %s1733_s1 = inlined_call_operand.vmem [shape: f32[8,128], index: 1, kind: input, shape index: {}]   ;;  %s1734_s2 = inlined_call_operand.vmem [shape: f32[128,8], index: 2, kind: input, shape index: {}]   ;;  %s1735_s3 = inlined_call_operand.hbm [shape: f32[2,128,256], index: 3, kind: output, shape index: {}]  }
   0x1   :  { %10 = vsyncpa [#allocation3 + $0x1], 0 }
   0x2   :  { %11 = vsyncpa [#allocation4], 0 }
   0x3   :  { %13 = vsyncpa [#allocation4 + $0x1], 0  ;;  %s1294_s12 = smov 0   ;;  %s1296_s13 = smov 0  }
   0x4   :  { %s1298_s14 = smov 0   ;;  %s1300_s15 = smov 0  }
   0x5 LB: > { %s1315_s16 = sadd.s32 4294967295, %s1262_s15   ;;  %s895_s17 = sadd.s32 4294967294, %s1262_s15   ;;  %s1262_s15 = sphi %s1300_s15, %s1748_s15   ;;  %s1258_s14 = sphi %s1298_s14, %s1747_s14   ;;  %s1254_s13 = sphi %s1296_s13, %s1746_s13   ;;  %s1250_s12 = sphi %s1294_s12, %s1745_s12  }
   0x6   : > { %s1319_s18 = sadd.s32 1, %s1262_s15   ;;  %s26_s19 = sadd.s32 1, %s1258_s14 }
   0x7   : > { %s23_s20 = ssub.s32 %s1262_s15, %s1319_s18  ;;  %p33_p0 = scmp.ne.s32.totalorder %s1258_s14, %s1254_s13 }
   0x8   : > { %p24_p1 = scmp.eq.s32.totalorder %s23_s20, 0  ;;  %p34_p2 = scmp.eq.s32.totalorder %s1262_s15, 0 }
   0x9   : > { %p39_p3 = scmp.ne.s32.totalorder %s1254_s13, %s1250_s12  ;;  %p40_p4 = scmp.eq.s32.totalorder %s1315_s16, 0 }
   0xa   : > { %s1331_s21 = scalar_select %p24_p1, %s1258_s14, %s26_s19  }
   0xb   : > { %p1333_p5 = por %p34_p2, %p33_p0  ;;  %p1337_p6 = por %p40_p4, %p39_p3 }
   0xc   : > { %p105_p7 = scmp.eq.s32.totalorder %s1315_s16, 1  ;;  %p111_p8 = scmp.eq.s32.totalorder %s895_s17, 1 }
   0xd   : > { %p1058_p10 = scmp.lt.s32.totalorder %s1262_s15, 2  ;;  %s137_s26 = sand.u32 1, %s1258_s14  }
   0xe   : > { %p1344_p11 = por %p105_p7, %p33_p0  ;;  %p1348_p12 = por %p111_p8, %p39_p3 }
   0xf   : > { %s925_s27 = sshll.u32 %s1262_s15, 12  ;;  %s898_s28 = sshll.u32 %s137_s26, 8 }
  0x10   : > { %s1739_s24 = scalar_select %p1344_p11, 1, 0 }
  0x11   : > { %s1740_s25 = scalar_select %p1348_p12, 1, 0 }
  0x12   : > { %s1357_s4 = scalar_lea.hbm %s1732_s0, %s925_s27  ;;  %s141_s5 = scalar_lea.vmem [#allocation2], %s898_s28 }
  0x13   : > { %s148_s6 = sshll.u32 %s141_s5, 4  ;;  %p1361_p13 = pnand %p1058_p10, %p1333_p5  ;;  %s1365_s6 = int_to_ptr.vmem [resolvable:$true] %s148_s6 }
  0x14   : > { %s1367_s8 = scalar_lea.sflag [#allocation3], %s137_s26  ;;  %s1166_s9 = scalar_lea.hbm %s1357_s4, 4096 }
  0x15   : > { %p1167_p0 = scmp.ne.s32.totalorder %s1357_s4, %s1166_s9  ;;  %p1168_p1 = pneg %p1361_p13 }
  0x16   : > { %s1171_s17 = scalar_lea.hbm %s1732_s0, 8192  ;;  %p1172_p4 = scmp.lt.u32.totalorder %s1357_s4, %s1732_s0 }
  0x17   : > { %p1169_p2 = pnand %p1168_p1, %p1167_p0  ;;  %p1173_p5 = scmp.lt.u32.totalorder %s1171_s17, %s1166_s9 }
  0x18   : > { %p1175_p8 = scmp.lt.u32.totalorder %s1166_s9, %s1357_s4 }
  0x19   : > { %p1170_p3 = pneg %p1169_p2  ;;  %p1174_p7 = por %p1173_p5, %p1172_p4 }
  0x1b   : > { %p1176_p10 = por %p1175_p8, %p1174_p7 }
  0x1d   : > { %p1177_p9 = pnand %p1176_p10, %p1170_p3 }
  0x1f   : > { %1180 = shalt.err (!%p1177_p9)
}
  0x20   : > { %s1181_s22 = scalar_lea.vmem %s1365_s6, 4096  ;;  %s1264_s26 = smov [#allocation2]  }
  0x21   : > { %p1182_p0 = scmp.ne.s32.totalorder %s1365_s6, %s1181_s22  ;;  %s1186_s27 = sshll.u32 %s1264_s26, 4  ;;  %s1187_s27 = int_to_ptr.vmem [resolvable:$false] %s1186_s27 }
  0x22   : > { %s1188_s28 = scalar_lea.vmem %s1187_s27, 8192  ;;  %p1189_p11 = scmp.lt.s32.totalorder %s1365_s6, %s1187_s27 }
  0x23   : > { %p1184_p2 = pnand %p1182_p0, %p1168_p1  ;;  %p1190_p4 = scmp.lt.s32.totalorder %s1188_s28, %s1181_s22 }
  0x25   : > { %p1185_p12 = pneg %p1184_p2  ;;  %p1191_p5 = por %p1190_p4, %p1189_p11 }
  0x27   : > { %p1192_p7 = pnand %p1191_p5, %p1185_p12 }
  0x29   : > { %1195 = shalt.err (!%p1192_p7)
}
  0x2a   : > { %s1265_s29 = smov 256   ;;  %s1266_s30 = smov 16  }
  0x2b   : > { %1053 = dma.hbm_to_vmem [thread:$0]  (!%p1361_p13), %s1357_s4, 4096, %s1365_s6, %s1367_s8, %s1265_s29, %s1265_s29, %s1266_s30  }
  0x2c   : > { %p901_p9 = scmp.ge.s32.totalorder %s1262_s15, 1  ;;  %p156_p1 = scmp.lt.s32.totalorder %s1262_s15, 3 }
  0x2e   : > { %p157_p3 = pnand %p901_p9, %p156_p1 }
  0x2f   : > { %s1398_s5 = sand.u32 (!%p157_p3), 1, %s1254_s13  }
  0x30   : > { %160 = sbr.rel (%p157_p3) target bundleno = 882 (0x372), region = 32  ;;  %s902_s9 = sshll.u32 (!%p157_p3), %s1398_s5, 8 }
  0x31   : > { %s163_s10 = scalar_lea.sflag (!%p157_p3), [#allocation3], %s1398_s5  ;;  %s1404_s11 = scalar_lea.vmem (!%p157_p3), [#allocation2], %s902_s9 }
  0x37   : > { %1241 = dma.done.wait (%p1337_p6), %s163_s10, 4096  }
  0x38   : > { %1243 = vsyncadd (%p1337_p6), %s163_s10, 4294963200  ;;  %v1411_v0 = vld [vmem:[%s1404_s11 + $0x20] sm:$0xff]  ;;  %v1414_v1 = vld [vmem:[%s1404_s11 + $0x28] sm:$0xff]  ;;  %v1267_v44 = vmov 0.0|0.0   ;;  %vm1268_vm0 = vmmov 0   ;;  %v1269_v49 = vmov 0.0  }
  0x39   : > { %v1417_v2 = vld [vmem:[%s1404_s11] sm:$0xff]  ;;  %v227_v3 = vadd.f32 %v1414_v1, %v1411_v0  ;;  %v1422_v4 = vld [vmem:[%s1404_s11 + $0x8] sm:$0xff]  ;;  %v1425_v5 = vld [vmem:[%s1404_s11 + $0x30] sm:$0xff]  ;;  %1022 = vmatprep.subr.bf16.mxu0 %v1267_v44  ;;  %993 = vmatprep.mubr.msk.f32.mxu0 %vm1268_vm0, %v1269_v49  ;;  %vm374_vm1 = vcmask 64512   ;;  %s1619_s6 = scalar_lea.vmem [#allocation5], %s902_s9  ;;  %s926_s9 = sshll.u32 %s1315_s16, 12 }
  0x3a   : > { %v1428_v6 = vld [vmem:[%s1404_s11 + $0x38] sm:$0xff]  ;;  %v221_v7 = vadd.f32 %v1422_v4, %v1417_v2  ;;  %v1433_v8 = vld [vmem:[%s1404_s11 + $0x10] sm:$0xff]  ;;  %v1449_v14 = vld [vmem:[%s1404_s11 + $0x40] sm:$0xff]  ;;  %s822_s7 = sshll.u32 %s1619_s6, 4  ;;  %s1682_s19 = scalar_lea.hbm %s1735_s3, %s926_s9  ;;  %s1684_s7 = int_to_ptr.vmem [resolvable:$true] %s822_s7 }
  0x3b   : > { %v1436_v9 = vld [vmem:[%s1404_s11 + $0x18] sm:$0xff]  ;;  %228 = vadd.xlane.f32.xlu1 %v227_v3  ;;  %v230_v10 = vadd.f32 %v1428_v6, %v1425_v5  ;;  %v1443_v12 = vld [vmem:[%s1404_s11 + $0x50] sm:$0xff]  ;;  %v1452_v15 = vld [vmem:[%s1404_s11 + $0x48] sm:$0xff]  ;;  %s809_s16 = scalar_lea.sflag [#allocation4], %s1398_s5  ;;  %s1196_s20 = scalar_lea.vmem %s1684_s7, 4096 }
  0x3c   : > { %222 = vadd.xlane.f32.xlu0 %v221_v7  ;;  %v224_v11 = vadd.f32 %v1436_v9, %v1433_v8  ;;  %v1446_v13 = vld [vmem:[%s1404_s11 + $0x58] sm:$0xff]  ;;  %v233_v17 = vadd.f32 %v1452_v15, %v1449_v14  ;;  %v1459_v18 = vld [vmem:[%s1404_s11 + $0x70] sm:$0xff]  ;;  %v1465_v20 = vld [vmem:[%s1404_s11 + $0x60] sm:$0xff]  ;;  %p1197_p6 = scmp.ne.s32.totalorder %s1684_s7, %s1196_s20  ;;  %p1742_p11 = scmp.ne.s32.totalorder %s1739_s24, 0 }
  0x3d   : > { %v236_v16 = vadd.f32 %v1446_v13, %v1443_v12  ;;  %v1462_v19 = vld [vmem:[%s1404_s11 + $0x78] sm:$0xff]  ;;  %v1468_v21 = vld [vmem:[%s1404_s11 + $0x68] sm:$0xff]  ;;  %v1475_v24 = vld [vmem:[%s1404_s11 + $0x90] sm:$0xff]  ;;  %s1271_s22 = smov [#allocation5]  }
  0x3e   : > { %v242_v22 = vadd.f32 %v1462_v19, %v1459_v18  ;;  %v239_v23 = vadd.f32 %v1468_v21, %v1465_v20  ;;  %v1478_v25 = vld [vmem:[%s1404_s11 + $0x98] sm:$0xff]  ;;  %v1481_v26 = vld [vmem:[%s1404_s11 + $0x80] sm:$0xff]  ;;  %v1484_v27 = vld [vmem:[%s1404_s11 + $0x88] sm:$0xff]  ;;  %p1198_p12 = pnand %p1197_p6, %p1742_p11  ;;  %s1200_s26 = sshll.u32 %s1271_s22, 4  ;;  %s1201_s26 = int_to_ptr.vmem [resolvable:$false] %s1200_s26 }
  0x3f   : > { %231 = vadd.xlane.f32.xlu1 %v230_v10  ;;  %v248_v28 = vadd.f32 %v1478_v25, %v1475_v24  ;;  %v245_v29 = vadd.f32 %v1484_v27, %v1481_v26  ;;  %v1491_v30 = vld [vmem:[%s1404_s11 + $0xb0] sm:$0xff]  ;;  %v1494_v31 = vld [vmem:[%s1404_s11 + $0xb8] sm:$0xff]  ;;  %v1497_v32 = vld [vmem:[%s1404_s11 + $0xa0] sm:$0xff]  ;;  %s1202_s27 = scalar_lea.vmem %s1201_s26, 8192  ;;  %p1203_p8 = scmp.lt.s32.totalorder %s1684_s7, %s1201_s26 }
  0x40   : > { %225 = vadd.xlane.f32.xlu0 %v224_v11  ;;  %v1500_v33 = vld [vmem:[%s1404_s11 + $0xa8] sm:$0xff]  ;;  %v254_v34 = vadd.f32 %v1494_v31, %v1491_v30  ;;  %v1507_v36 = vld [vmem:[%s1404_s11 + $0xd0] sm:$0xff]  ;;  %v1510_v37 = vld [vmem:[%s1404_s11 + $0xd8] sm:$0xff]  ;;  %p1199_p13 = pneg %p1198_p12  ;;  %p1204_p10 = scmp.lt.s32.totalorder %s1202_s27, %s1196_s20 }
  0x41   : > { %v251_v35 = vadd.f32 %v1500_v33, %v1497_v32  ;;  %v1513_v38 = vld [vmem:[%s1404_s11 + $0xc0] sm:$0xff]  ;;  %v1516_v39 = vld [vmem:[%s1404_s11 + $0xc8] sm:$0xff]  ;;  %v260_v40 = vadd.f32 %v1510_v37, %v1507_v36  ;;  %v1523_v42 = vld [vmem:[%s1404_s11 + $0xf0] sm:$0xff] }
  0x42   : > { %v257_v41 = vadd.f32 %v1516_v39, %v1513_v38  ;;  %v1526_v43 = vld [vmem:[%s1404_s11 + $0xf8] sm:$0xff]  ;;  %v1530_v45 = vld [vmem:[%s1404_s11 + $0xe0] sm:$0xff]  ;;  %v1533_v46 = vld [vmem:[%s1404_s11 + $0xe8] sm:$0xff]  ;;  %p1205_p0 = por %p1204_p10, %p1203_p8 }
  0x43   : > { %237 = vadd.xlane.f32.xlu1 %v236_v16  ;;  %v266_v47 = vadd.f32 %v1526_v43, %v1523_v42  ;;  %v263_v48 = vadd.f32 %v1533_v46, %v1530_v45 }
  0x44   : > { %234 = vadd.xlane.f32.xlu0 %v233_v17  ;;  %p1206_p2 = pnand %p1205_p0, %p1199_p13 }
  0x47   : > { %243 = vadd.xlane.f32.xlu1 %v242_v22 }
  0x48   : > { %240 = vadd.xlane.f32.xlu0 %v239_v23 }
  0x4b   : > { %249 = vadd.xlane.f32.xlu1 %v248_v28 }
  0x4c   : > { %246 = vadd.xlane.f32.xlu0 %v245_v29 }
  0x4f   : > { %255 = vadd.xlane.f32.xlu1 %v254_v34 }
  0x50   : > { %252 = vadd.xlane.f32.xlu0 %v251_v35 }
  0x53   : > { %261 = vadd.xlane.f32.xlu1 %v260_v40 }
  0x54   : > { %258 = vadd.xlane.f32.xlu0 %v257_v41 }
  0x57   : > { %267 = vadd.xlane.f32.xlu1 %v266_v47 }
  0x58   : > { %264 = vadd.xlane.f32.xlu0 %v263_v48 }
  0xc8   : > { %v229_v50 = vpop.xlane.xlu1 %228 }
  0xc9   : > { %v223_v51 = vpop.xlane.xlu0 %222  ;;  %v272_v56 = vmul.f32 0.00390625, %v229_v50 }
  0xca   : > { %v270_v54 = vmul.f32 0.00390625, %v223_v51 }
  0xcc   : > { %v232_v52 = vpop.xlane.xlu1 %231 }
  0xcd   : > { %v226_v53 = vpop.xlane.xlu0 %225  ;;  %v273_v57 = vmul.f32 0.00390625, %v232_v52 }
  0xce   : > { %v271_v55 = vmul.f32 0.00390625, %v226_v53 }
  0xcf   : > { %v1026_v63 = vpack.c.bf16 %v273_v57, %v272_v56 }
  0xd0   : > { %v1023_v58 = vpack.c.bf16 %v271_v55, %v270_v54  ;;  %v238_v59 = vpop.xlane.xlu1 %237 }
  0xd1   : > { %v235_v60 = vpop.xlane.xlu0 %234  ;;  %v275_v61 = vmul.f32 0.00390625, %v238_v59  ;;  %v286_v59 = vld [vmem:[%s1733_s1] sm:$0xff] }
  0xd2   : > { %1024 = vmatpush3.bf16.msra.mxu0 %v1023_v58  ;;  %v274_v62 = vmul.f32 0.00390625, %v235_v60  ;;  %v358_v60 = vld [vmem:[%s1734_s2] sm:$0xff] }
  0xd3   : > { %1025 = vmatprep.subr.bf16.mxu0 %v1267_v44  ;;  %998 = vmatprep.mubr.msk.f32.mxu1 %vm374_vm1, %v358_v60 }
  0xd4   : > { %v244_v3 = vpop.xlane.xlu1 %243  ;;  %v1029_v10 = vpack.c.bf16 %v275_v61, %v274_v62 }
  0xd5   : > { %v241_v7 = vpop.xlane.xlu0 %240  ;;  %v277_v11 = vmul.f32 0.00390625, %v244_v3  ;;  %v360_v3 = vld [vmem:[%s1734_s2 + $0x10] sm:$0xff] }
  0xd6   : > { %1027 = vmatpush3.bf16.msra.mxu0 %v1026_v63  ;;  %v276_v16 = vmul.f32 0.00390625, %v241_v7  ;;  %v361_v7 = vld [vmem:[%s1734_s2 + $0x18] sm:$0xff] }
  0xd7   : > { %1028 = vmatprep.subr.bf16.mxu0 %v1267_v44 }
  0xd8   : > { %v250_v17 = vpop.xlane.xlu1 %249  ;;  %v1032_v23 = vpack.c.bf16 %v277_v11, %v276_v16  ;;  %v363_v11 = vld [vmem:[%s1734_s2 + $0x28] sm:$0xff]  ;;  %v364_v16 = vld [vmem:[%s1734_s2 + $0x30] sm:$0xff] }
  0xd9   : > { %v247_v22 = vpop.xlane.xlu0 %246  ;;  %v279_v28 = vmul.f32 0.00390625, %v250_v17  ;;  %v365_v17 = vld [vmem:[%s1734_s2 + $0x38] sm:$0xff] }
  0xda   : > { %1030 = vmatpush3.bf16.msra.mxu0 %v1029_v10  ;;  %v278_v29 = vmul.f32 0.00390625, %v247_v22  ;;  %v362_v10 = vld [vmem:[%s1734_s2 + $0x20] sm:$0xff] }
  0xdb   : > { %1031 = vmatprep.subr.bf16.mxu0 %v1267_v44  ;;  %v366_v22 = vld [vmem:[%s1734_s2 + $0x40] sm:$0xff] }
  0xdc   : > { %v256_v34 = vpop.xlane.xlu1 %255  ;;  %v1035_v40 = vpack.c.bf16 %v279_v28, %v278_v29  ;;  %v368_v28 = vld [vmem:[%s1734_s2 + $0x50] sm:$0xff]  ;;  %v369_v29 = vld [vmem:[%s1734_s2 + $0x58] sm:$0xff] }
  0xdd   : > { %v253_v35 = vpop.xlane.xlu0 %252  ;;  %v281_v41 = vmul.f32 0.00390625, %v256_v34  ;;  %v370_v34 = vld [vmem:[%s1734_s2 + $0x60] sm:$0xff] }
  0xde   : > { %1033 = vmatpush3.bf16.msra.mxu0 %v1032_v23  ;;  %v280_v47 = vmul.f32 0.00390625, %v253_v35  ;;  %v367_v23 = vld [vmem:[%s1734_s2 + $0x48] sm:$0xff] }
  0xdf   : > { %1034 = vmatprep.subr.bf16.mxu0 %v1267_v44  ;;  %v371_v35 = vld [vmem:[%s1734_s2 + $0x68] sm:$0xff] }
  0xe0   : > { %v262_v48 = vpop.xlane.xlu1 %261  ;;  %v1038_v50 = vpack.c.bf16 %v281_v41, %v280_v47  ;;  %v373_v41 = vld [vmem:[%s1734_s2 + $0x78] sm:$0xff]  ;;  %v1270_v47 = vmov 0  }
  0xe1   : > { %v259_v49 = vpop.xlane.xlu0 %258  ;;  %v283_v51 = vmul.f32 0.00390625, %v262_v48  ;;  %1100 = vset.pattern.permute.xlu1 %v1270_v47  ;;  %1101 = vset.pattern.permute.xlu0 %v1270_v47 }
  0xe2   : > { %1036 = vmatpush3.bf16.msra.mxu0 %v1035_v40  ;;  %v282_v52 = vmul.f32 0.00390625, %v259_v49  ;;  %v372_v40 = vld [vmem:[%s1734_s2 + $0x70] sm:$0xff] }
  0xe3   : > { %1037 = vmatprep.subr.bf16.mxu0 %v1267_v44 }
  0xe4   : > { %v268_v53 = vpop.xlane.xlu1 %267  ;;  %v1041_v55 = vpack.c.bf16 %v283_v51, %v282_v52 }
  0xe5   : > { %v265_v54 = vpop.xlane.xlu0 %264  ;;  %v285_v56 = vmul.f32 0.00390625, %v268_v53 }
  0xe6   : > { %1039 = vmatpush3.bf16.msra.mxu0 %v1038_v50  ;;  %v284_v57 = vmul.f32 0.00390625, %v265_v54 }
  0xe7   : > { %1040 = vmatprep.subr.bf16.mxu0 %v1267_v44 }
  0xe8   : > { %v1044_v58 = vpack.c.bf16 %v285_v56, %v284_v57 }
  0xea   : > { %1042 = vmatpush3.bf16.msra.mxu0 %v1041_v55 }
  0xeb   : > { %1043 = vmatprep.subr.bf16.mxu0 %v1267_v44  ;;  %v359_v44 = vld [vmem:[%s1734_s2 + $0x8] sm:$0xff] }
  0xee   : > { %1045 = vmatpush3.bf16.msra.mxu0 %v1044_v58 }
  0xf1   : > { %994 = vmatmul.mubr.f32.vlgmr.msra.gmra.mrb[0].mxu0 %v286_v59 }
 0x1c4   : > { %v353_v61 = vpop.f32.mrb[0].mxu0 }
 0x1c5   : > { %v357_v62 = vmax.f32 %v353_v61, 0.0  ;;  %v995_v63 = vpop.f32.mrb[1].mxu0 }
 0x1c7   : > { %996 = vmatprep.subr.mxu1 %v357_v62 }
 0x1c8   : > { %997 = vmatpush3.msra.mxu1 %v357_v62 }
 0x1c9   : > { %999 = vmatmul.mubr.msk.f32.vlgmr.msra.gmra.mrb[0].mxu1 %vm374_vm1, %v359_v44 }
 0x1ca   : > { %1001 = vmatprep.mubr.msk.f32.mxu1 %vm374_vm1, %v360_v3 }
 0x1cd   : > { %1002 = vmatmul.mubr.msk.f32.gmra.mrb[2].mxu1 %vm374_vm1, %v361_v7 }
 0x1ce   : > { %1004 = vmatprep.mubr.msk.f32.mxu1 %vm374_vm1, %v362_v10 }
 0x1d1   : > { %1005 = vmatmul.mubr.msk.f32.gmra.mrb[4].mxu1 %vm374_vm1, %v363_v11 }
 0x1d2   : > { %1007 = vmatprep.mubr.msk.f32.mxu1 %vm374_vm1, %v364_v16 }
 0x1d5   : > { %1008 = vmatmul.mubr.msk.f32.gmra.mrb[6].mxu1 %vm374_vm1, %v365_v17 }
 0x1d6   : > { %1010 = vmatprep.mubr.msk.f32.mxu1 %vm374_vm1, %v366_v22 }
 0x1d9   : > { %1011 = vmatmul.mubr.msk.f32.gmra.mrb[8].mxu1 %vm374_vm1, %v367_v23 }
 0x1da   : > { %1013 = vmatprep.mubr.msk.f32.mxu1 %vm374_vm1, %v368_v28 }
 0x1dd   : > { %1014 = vmatmul.mubr.msk.f32.gmra.mrb[10].mxu1 %vm374_vm1, %v369_v29 }
 0x1de   : > { %1016 = vmatprep.mubr.msk.f32.mxu1 %vm374_vm1, %v370_v34 }
 0x1e1   : > { %1017 = vmatmul.mubr.msk.f32.gmra.mrb[12].mxu1 %vm374_vm1, %v371_v35 }
 0x1e2   : > { %1019 = vmatprep.mubr.msk.f32.mxu1 %vm374_vm1, %v372_v40 }
 0x1e5   : > { %1020 = vmatmul.mubr.msk.f32.gmra.mrb[14].mxu1 %vm374_vm1, %v373_v41 }
 0x29c   : > { %v1000_v48 = vpop.f32.mrb[0].mxu1 }
 0x29d   : > { %v569_v49 = vsub.f32 0.0, %v1000_v48  ;;  %v489_v50 = vpop.f32.mrb[1].mxu1 }
 0x29e   : > { %v568_v51 = vsub.f32 0.0, %v489_v50 }
 0x29f   : > { %v586_v52 = vmul.f32 1.442695, %v569_v49 }
 0x2a0   : > { %v584_v53 = vmul.f32 1.442695, %v568_v51  ;;  %v1003_v54 = vpop.f32.mrb[2].mxu1 }
 0x2a1   : > { %1102 = vpow2.f32 %v586_v52  ;;  %v571_v55 = vsub.f32 0.0, %v1003_v54  ;;  %v499_v56 = vpop.f32.mrb[3].mxu1 }
 0x2a2   : > { %1104 = vpow2.f32 %v584_v53  ;;  %v570_v57 = vsub.f32 0.0, %v499_v56 }
 0x2a3   : > { %v590_v58 = vmul.f32 1.442695, %v571_v55 }
 0x2a4   : > { %v588_v59 = vmul.f32 1.442695, %v570_v57  ;;  %v1006_v60 = vpop.f32.mrb[4].mxu1 }
 0x2a5   : > { %1106 = vpow2.f32 %v590_v58  ;;  %v573_v61 = vsub.f32 0.0, %v1006_v60  ;;  %v509_v62 = vpop.f32.mrb[5].mxu1 }
 0x2a6   : > { %1108 = vpow2.f32 %v588_v59  ;;  %v572_v63 = vsub.f32 0.0, %v509_v62 }
 0x2a7   : > { %v594_v44 = vmul.f32 1.442695, %v573_v61 }
 0x2a8   : > { %v592_v3 = vmul.f32 1.442695, %v572_v63  ;;  %v1009_v7 = vpop.f32.mrb[6].mxu1 }
 0x2a9   : > { %1110 = vpow2.f32 %v594_v44  ;;  %v575_v10 = vsub.f32 0.0, %v1009_v7  ;;  %v519_v11 = vpop.f32.mrb[7].mxu1 }
 0x2aa   : > { %1112 = vpow2.f32 %v592_v3  ;;  %v574_v28 = vsub.f32 0.0, %v519_v11 }
 0x2ab   : > { %v1103_v16 = vpop.eup %1102  ;;  %v598_v17 = vmul.f32 1.442695, %v575_v10 }
 0x2ac   : > { %v1105_v22 = vpop.eup %1104  ;;  %v617_v23 = vadd.f32 1.0, %v1103_v16  ;;  %v1012_v29 = vpop.f32.mrb[8].mxu1  ;;  %v596_v51 = vmul.f32 1.442695, %v574_v28 }
 0x2ad   : > { %v616_v34 = vadd.f32 1.0, %v1105_v22  ;;  %1114 = vpow2.f32 %v598_v17  ;;  %v577_v35 = vsub.f32 0.0, %v1012_v29  ;;  %v529_v40 = vpop.f32.mrb[9].mxu1 }
 0x2ae   : > { %1116 = vrcp.f32 %v617_v23  ;;  %v576_v48 = vsub.f32 0.0, %v529_v40 }
 0x2af   : > { %v1107_v41 = vpop.eup %1106  ;;  %1118 = vrcp.f32 %v616_v34  ;;  %v602_v47 = vmul.f32 1.442695, %v577_v35 }
 0x2b0   : > { %v1109_v49 = vpop.eup %1108  ;;  %v619_v50 = vadd.f32 1.0, %v1107_v41  ;;  %v1015_v52 = vpop.f32.mrb[10].mxu1  ;;  %v600_v58 = vmul.f32 1.442695, %v576_v48 }
 0x2b1   : > { %1120 = vpow2.f32 %v602_v47  ;;  %v579_v53 = vsub.f32 0.0, %v1015_v52  ;;  %v539_v54 = vpop.f32.mrb[11].mxu1  ;;  %v618_v55 = vadd.f32 1.0, %v1109_v49 }
 0x2b2   : > { %1122 = vrcp.f32 %v619_v50  ;;  %v578_v56 = vsub.f32 0.0, %v539_v54 }
 0x2b3   : > { %v1111_v57 = vpop.eup %1110  ;;  %v606_v59 = vmul.f32 1.442695, %v579_v53  ;;  %1124 = vpow2.f32 %v596_v51 }
 0x2b4   : > { %v621_v60 = vadd.f32 1.0, %v1111_v57  ;;  %v1018_v61 = vpop.f32.mrb[12].mxu1  ;;  %v1113_v62 = vpop.eup %1112  ;;  %v604_v3 = vmul.f32 1.442695, %v578_v56 }
 0x2b5   : > { %1126 = vpow2.f32 %v606_v59  ;;  %v581_v63 = vsub.f32 0.0, %v1018_v61  ;;  %v549_v44 = vpop.f32.mrb[13].mxu1  ;;  %v620_v17 = vadd.f32 1.0, %v1113_v62 }
 0x2b6   : > { %1128 = vrcp.f32 %v618_v55  ;;  %v580_v7 = vsub.f32 0.0, %v549_v44 }
 0x2b7   : > { %v1115_v10 = vpop.eup %1114  ;;  %1130 = vpow2.f32 %v600_v58  ;;  %v610_v11 = vmul.f32 1.442695, %v581_v63 }
 0x2b8   : > { %v1117_v16 = vpop.eup %1116  ;;  %1132 = vrcp.f32 %v621_v60  ;;  %v1021_v22 = vpop.f32.mrb[14].mxu1  ;;  %v608_v28 = vmul.f32 1.442695, %v580_v7  ;;  %v623_v48 = vadd.f32 1.0, %v1115_v10 }
 0x2b9   : > { %v1119_v23 = vpop.eup %1118  ;;  %1134 = vpow2.f32 %v610_v11  ;;  %v583_v29 = vsub.f32 0.0, %v1021_v22  ;;  %671 = vperm.xlu1 %1100, %v1117_v16   ;;  %v559_v34 = vpop.f32.mrb[15].mxu1 }
 0x2ba   : > { %1136 = vpow2.f32 %v604_v3  ;;  %666 = vperm.xlu0 %1101, %v1119_v23   ;;  %v582_v41 = vsub.f32 0.0, %v559_v34 }
 0x2bb   : > { %v1121_v35 = vpop.eup %1120  ;;  %v614_v40 = vmul.f32 1.442695, %v583_v29  ;;  %1138 = vrcp.f32 %v620_v17 }
 0x2bc   : > { %v1123_v47 = vpop.eup %1122  ;;  %v625_v49 = vadd.f32 1.0, %v1121_v35  ;;  %1140 = vpow2.f32 %v608_v28  ;;  %v612_v52 = vmul.f32 1.442695, %v582_v41 }
 0x2bd   : > { %681 = vperm.xlu1 %1100, %v1123_v47   ;;  %v1125_v50 = vpop.eup %1124 }
 0x2be   : > { %1142 = vrcp.f32 %v625_v49  ;;  %v622_v56 = vadd.f32 1.0, %v1125_v50 }
 0x2bf   : > { %v1127_v51 = vpop.eup %1126  ;;  %1144 = vpow2.f32 %v614_v40 }
 0x2c0   : > { %v1129_v53 = vpop.eup %1128  ;;  %1146 = vrcp.f32 %v623_v48  ;;  %v627_v54 = vadd.f32 1.0, %v1127_v51 }
 0x2c1   : > { %v1131_v55 = vpop.eup %1130  ;;  %676 = vperm.xlu1 %1100, %v1129_v53  }
 0x2c2   : > { %v1133_v57 = vpop.eup %1132  ;;  %1148 = vrcp.f32 %v627_v54  ;;  %v624_v60 = vadd.f32 1.0, %v1131_v55 }
 0x2c3   : > { %v1135_v58 = vpop.eup %1134  ;;  %1150 = vpow2.f32 %v612_v52 }
 0x2c4   : > { %v1137_v59 = vpop.eup %1136  ;;  %v629_v61 = vadd.f32 1.0, %v1135_v58  ;;  %1152 = vrcp.f32 %v622_v56 }
 0x2c5   : > { %691 = vperm.xlu1 %1100, %v1133_v57   ;;  %v1139_v62 = vpop.eup %1138  ;;  %v626_v44 = vadd.f32 1.0, %v1137_v59 }
 0x2c6   : > { %1154 = vrcp.f32 %v629_v61  ;;  %v1141_v63 = vpop.eup %1140 }
 0x2c7   : > { %1156 = vrcp.f32 %v624_v60  ;;  %v628_v17 = vadd.f32 1.0, %v1141_v63 }
 0x2c8   : > { %v1143_v3 = vpop.eup %1142  ;;  %1158 = vrcp.f32 %v626_v44 }
 0x2c9   : > { %v1145_v7 = vpop.eup %1144  ;;  %686 = vperm.xlu1 %1100, %v1139_v62   ;;  %711 = vperm.xlu0 %1101, %v1143_v3  }
 0x2ca   : > { %v1147_v10 = vpop.eup %1146  ;;  %v631_v11 = vadd.f32 1.0, %v1145_v7 }
 0x2cc   : > { %v1149_v16 = vpop.eup %1148  ;;  %1160 = vrcp.f32 %v631_v11 }
 0x2cd   : > { %v1151_v22 = vpop.eup %1150  ;;  %701 = vperm.xlu1 %1100, %v1147_v10   ;;  %721 = vperm.xlu0 %1101, %v1149_v16   ;;  %1162 = vrcp.f32 %v628_v17 }
 0x2ce   : > { %v1153_v23 = vpop.eup %1152  ;;  %v630_v29 = vadd.f32 1.0, %v1151_v22 }
 0x2d0   : > { %v1155_v28 = vpop.eup %1154  ;;  %1164 = vrcp.f32 %v630_v29 }
 0x2d1   : > { %696 = vperm.xlu1 %1100, %v1153_v23   ;;  %731 = vperm.xlu0 %1101, %v1155_v28   ;;  %v1157_v34 = vpop.eup %1156 }
 0x2d2   : > { %v1159_v35 = vpop.eup %1158 }
 0x2d5   : > { %706 = vperm.xlu1 %1100, %v1157_v34  }
 0x2d6   : > { %v1161_v40 = vpop.eup %1160 }
 0x2d7   : > { %741 = vperm.xlu0 %1101, %v1161_v40   ;;  %v1163_v41 = vpop.eup %1162 }
 0x2d9   : > { %716 = vperm.xlu1 %1100, %v1159_v35  }
 0x2da   : > { %v1165_v47 = vpop.eup %1164 }
 0x2dd   : > { %726 = vperm.xlu1 %1100, %v1163_v41  }
 0x2e1   : > { %736 = vperm.xlu1 %1100, %v1165_v47  }
 0x338   : > { %v672_v48 = vpop.permute.xlu1 %671 }
 0x339   : > { %v746_v49 = vmul.f32 %v672_v48, %v1433_v8  ;;  %v747_v50 = vmul.f32 %v672_v48, %v1436_v9  ;;  %v667_v51 = vpop.permute.xlu0 %666 }
 0x33a   : > { %v744_v52 = vmul.f32 %v667_v51, %v1417_v2  ;;  %v745_v53 = vmul.f32 %v667_v51, %v1422_v4 }
 0x33b   : > { %778 = vst [vmem:[%s1619_s6 + $0x10] sm:$0xff] %v746_v49  ;;  %779 = vst [vmem:[%s1619_s6 + $0x18] sm:$0xff] %v747_v50 }
 0x33c   : > { %776 = vst [vmem:[%s1619_s6] sm:$0xff] %v744_v52  ;;  %777 = vst [vmem:[%s1619_s6 + $0x8] sm:$0xff] %v745_v53  ;;  %v682_v2 = vpop.permute.xlu1 %681 }
 0x33d   : > { %v750_v4 = vmul.f32 %v682_v2, %v1425_v5  ;;  %v751_v8 = vmul.f32 %v682_v2, %v1428_v6 }
 0x33f   : > { %782 = vst [vmem:[%s1619_s6 + $0x30] sm:$0xff] %v750_v4  ;;  %783 = vst [vmem:[%s1619_s6 + $0x38] sm:$0xff] %v751_v8 }
 0x340   : > { %v677_v9 = vpop.permute.xlu1 %676 }
 0x341   : > { %v748_v54 = vmul.f32 %v677_v9, %v1411_v0  ;;  %v749_v55 = vmul.f32 %v677_v9, %v1414_v1 }
 0x343   : > { %780 = vst [vmem:[%s1619_s6 + $0x20] sm:$0xff] %v748_v54  ;;  %781 = vst [vmem:[%s1619_s6 + $0x28] sm:$0xff] %v749_v55 }
 0x344   : > { %v692_v56 = vpop.permute.xlu1 %691 }
 0x345   : > { %v754_v57 = vmul.f32 %v692_v56, %v1443_v12  ;;  %v755_v5 = vmul.f32 %v692_v56, %v1446_v13 }
 0x347   : > { %786 = vst [vmem:[%s1619_s6 + $0x50] sm:$0xff] %v754_v57  ;;  %787 = vst [vmem:[%s1619_s6 + $0x58] sm:$0xff] %v755_v5 }
 0x348   : > { %v687_v6 = vpop.permute.xlu1 %686  ;;  %v712_v58 = vpop.permute.xlu0 %711 }
 0x349   : > { %v752_v0 = vmul.f32 %v687_v6, %v1449_v14  ;;  %v753_v1 = vmul.f32 %v687_v6, %v1452_v15  ;;  %v762_v59 = vmul.f32 %v712_v58, %v1475_v24  ;;  %v763_v60 = vmul.f32 %v712_v58, %v1478_v25 }
 0x34b   : > { %784 = vst [vmem:[%s1619_s6 + $0x40] sm:$0xff] %v752_v0  ;;  %785 = vst [vmem:[%s1619_s6 + $0x48] sm:$0xff] %v753_v1 }
 0x34c   : > { %794 = vst [vmem:[%s1619_s6 + $0x90] sm:$0xff] %v762_v59  ;;  %795 = vst [vmem:[%s1619_s6 + $0x98] sm:$0xff] %v763_v60  ;;  %v702_v12 = vpop.permute.xlu1 %701  ;;  %v722_v13 = vpop.permute.xlu0 %721 }
 0x34d   : > { %v758_v61 = vmul.f32 %v702_v12, %v1459_v18  ;;  %v759_v14 = vmul.f32 %v702_v12, %v1462_v19  ;;  %v766_v15 = vmul.f32 %v722_v13, %v1491_v30  ;;  %v767_v24 = vmul.f32 %v722_v13, %v1494_v31 }
 0x34f   : > { %790 = vst [vmem:[%s1619_s6 + $0x70] sm:$0xff] %v758_v61  ;;  %791 = vst [vmem:[%s1619_s6 + $0x78] sm:$0xff] %v759_v14 }
 0x350   : > { %798 = vst [vmem:[%s1619_s6 + $0xb0] sm:$0xff] %v766_v15  ;;  %799 = vst [vmem:[%s1619_s6 + $0xb8] sm:$0xff] %v767_v24  ;;  %v697_v25 = vpop.permute.xlu1 %696  ;;  %v732_v62 = vpop.permute.xlu0 %731 }
 0x351   : > { %v756_v63 = vmul.f32 %v697_v25, %v1465_v20  ;;  %v757_v18 = vmul.f32 %v697_v25, %v1468_v21  ;;  %v770_v19 = vmul.f32 %v732_v62, %v1507_v36  ;;  %v771_v30 = vmul.f32 %v732_v62, %v1510_v37 }
 0x353   : > { %788 = vst [vmem:[%s1619_s6 + $0x60] sm:$0xff] %v756_v63  ;;  %789 = vst [vmem:[%s1619_s6 + $0x68] sm:$0xff] %v757_v18 }
 0x354   : > { %802 = vst [vmem:[%s1619_s6 + $0xd0] sm:$0xff] %v770_v19  ;;  %803 = vst [vmem:[%s1619_s6 + $0xd8] sm:$0xff] %v771_v30  ;;  %v707_v31 = vpop.permute.xlu1 %706 }
 0x355   : > { %v760_v44 = vmul.f32 %v707_v31, %v1481_v26  ;;  %v761_v3 = vmul.f32 %v707_v31, %v1484_v27 }
 0x356   : > { %v742_v20 = vpop.permute.xlu0 %741 }
 0x357   : > { %792 = vst [vmem:[%s1619_s6 + $0x80] sm:$0xff] %v760_v44  ;;  %793 = vst [vmem:[%s1619_s6 + $0x88] sm:$0xff] %v761_v3  ;;  %v774_v21 = vmul.f32 %v742_v20, %v1523_v42  ;;  %v775_v36 = vmul.f32 %v742_v20, %v1526_v43 }
 0x358   : > { %v717_v37 = vpop.permute.xlu1 %716 }
 0x359   : > { %806 = vst [vmem:[%s1619_s6 + $0xf0] sm:$0xff] %v774_v21  ;;  %807 = vst [vmem:[%s1619_s6 + $0xf8] sm:$0xff] %v775_v36  ;;  %v764_v7 = vmul.f32 %v717_v37, %v1497_v32  ;;  %v765_v26 = vmul.f32 %v717_v37, %v1500_v33 }
 0x35b   : > { %796 = vst [vmem:[%s1619_s6 + $0xa0] sm:$0xff] %v764_v7  ;;  %797 = vst [vmem:[%s1619_s6 + $0xa8] sm:$0xff] %v765_v26 }
 0x35c   : > { %v727_v27 = vpop.permute.xlu1 %726 }
 0x35d   : > { %v768_v10 = vmul.f32 %v727_v27, %v1513_v38  ;;  %v769_v42 = vmul.f32 %v727_v27, %v1516_v39 }
 0x35f   : > { %800 = vst [vmem:[%s1619_s6 + $0xc0] sm:$0xff] %v768_v10  ;;  %801 = vst [vmem:[%s1619_s6 + $0xc8] sm:$0xff] %v769_v42 }
 0x360   : > { %v737_v43 = vpop.permute.xlu1 %736 }
 0x361   : > { %v772_v32 = vmul.f32 %v737_v43, %v1530_v45  ;;  %v773_v33 = vmul.f32 %v737_v43, %v1533_v46 }
 0x363   : > { %804 = vst [vmem:[%s1619_s6 + $0xe0] sm:$0xff] %v772_v32  ;;  %805 = vst [vmem:[%s1619_s6 + $0xe8] sm:$0xff] %v773_v33 }
 0x364   : > { %1209 = shalt.err (!%p1206_p2)
}
 0x365   : > { %s1210_s28 = scalar_lea.hbm %s1682_s19, 4096  ;;  %s1214_s10 = scalar_lea.hbm %s1735_s3, 8192 }
 0x366   : > { %p1211_p4 = scmp.ne.s32.totalorder %s1682_s19, %s1210_s28  ;;  %p1215_p9 = scmp.lt.u32.totalorder %s1682_s19, %s1735_s3 }
 0x367   : > { %p1216_p1 = scmp.lt.u32.totalorder %s1214_s10, %s1210_s28  ;;  %p1218_p6 = scmp.lt.u32.totalorder %s1210_s28, %s1682_s19 }
 0x368   : > { %p1212_p5 = pnand %p1211_p4, %p1742_p11 }
 0x369   : > { %p1217_p3 = por %p1216_p1, %p1215_p9 }
 0x36a   : > { %p1213_p7 = pneg %p1212_p5 }
 0x36b   : > { %p1219_p12 = por %p1218_p6, %p1217_p3 }
 0x36d   : > { %p1220_p13 = pnand %p1219_p12, %p1213_p7 }
 0x36f   : > { %1223 = shalt.err (!%p1220_p13)
}
 0x370   : > { %s1272_s4 = smov 256   ;;  %s1273_s6 = smov 16  }
 0x371   : > { %1048 = dma.vmem_to_hbm [thread:$0]  (%p1742_p11), %s1684_s7, 4096, %s1682_s19, %s809_s16, %s1272_s4, %s1272_s4, %s1273_s6  }
 0x372 PF: > { %s837_s9 = sand.u32 1, %s1250_s12   ;;  %p1743_p8 = scmp.ne.s32.totalorder %s1740_s25, 0 }
 0x373   : > { %p1744_p10 = scmp.ge.s32.totalorder %s1262_s15, 2  ;;  %s838_s8 = scalar_lea.sflag [#allocation4], %s837_s9 }
 0x375   : > { %p1055_p0 = pnand %p1744_p10, %p1743_p8 }
 0x377   : > { %1245 = dma.done.wait (!%p1055_p0), %s838_s8, 4096  }
 0x378   : > { %1247 = vsyncadd (!%p1055_p0), %s838_s8, 4294963200  ;;  %p16_p2 = scmp.ge.s32.totalorder %s1319_s18, 4   ;;  %s1745_s12 = smov %s1254_s13 }
 0x379   : > { %s1746_s13 = smov %s1258_s14  ;;  %s1747_s14 = smov %s1331_s21 }
 0x37a   : > { %s1748_s15 = smov %s1319_s18  ;;  %18 = sbr.rel (!%p16_p2) target bundleno = 5 (0x5), region = 77 }
 0x381   :  { %843 = vsyncpa [#allocation3], 1 }
 0x382   :  { %845 = vsyncpa [#allocation3 + $0x1], 1 }
 0x383   :  { %846 = vsyncpa [#allocation4], 1 }
 0x384   :  { %848 = vsyncpa [#allocation4 + $0x1], 1 }

</bundles_post_ra>
